<compile_context>
chip_gen: v6e
topology: v6e:2x2x1
jax: 0.10.0
libtpu: 0.0.40
codegen_flags: <defaults>
</compile_context>

<pallas_src>
import jax
import jax.numpy as jnp
from jax.experimental import pallas as pl
from jax.experimental.pallas import tpu as pltpu


def _round_up(a, m):
    return (a + m - 1) // m * m


def _ffn_kernel(x_ref, w13_ref, b13_ref, w2_ref, b2_ref, o_ref):
    h = pl.program_id(1)

    @pl.when(h == 0)
    def _init():
        # b2 is added exactly once (at init); partial products accumulate
        # directly into the resident f32 output block — no scratch, no
        # finalize copy.
        o_ref[...] = jnp.broadcast_to(b2_ref[...], o_ref.shape).astype(o_ref.dtype)

    x = x_ref[...].astype(jnp.bfloat16)                      # [tb, Dp] (cast in-register)

    # Fused gate matmul: one MXU pass over x produces both branches for this
    # hidden tile.  D (the contraction dim) is fully resident, so h1/h3 are
    # exact for this slice of hidden units -> gating is exact per hidden tile.
    w13 = w13_ref[0]                                         # [Dp, 2*th] bf16
    h13 = jnp.dot(x, w13, preferred_element_type=jnp.float32) + b13_ref[0]
    th = h13.shape[-1] // 2
    h1 = h13[:, :th]
    h3 = h13[:, th:]
    gated = (h1 * jax.nn.sigmoid(h1)) * h3                   # silu(h1)*h3, f32

    # Partial contribution of this hidden tile to the output (bf16 MXU feed,
    # f32 accumulate).  The [tb, hidden] intermediate never exists full-width.
    o_ref[...] += jnp.dot(gated.astype(jnp.bfloat16), w2_ref[...],
                          preferred_element_type=jnp.float32)


def prepare_params(params, dim, *, block_hidden=256):
    """One-time weight prep (call once at param-load time, NOT per forward):
    transpose PyTorch [out, in] -> [in, out], pad lane dims to multiples of
    128, cast weights to bf16, fuse w1/w3 (and b1/b3) per hidden tile, and
    pre-block the fused gate weight so each tile is a contiguous HBM slab."""
    Dp = _round_up(dim, 128)   # model dim (x / output lanes)
    Hp = _round_up(dim, 128)   # hidden dim (== dim in this module)

    # Hidden tile: multiple of 128 lanes dividing Hp.  256 default fills the
    # v6e/v7x 256x256 MXU; falls back to 128 if Hp isn't a multiple of 256.
    th = block_hidden if Hp % block_hidden == 0 else 128
    th = min(th, Hp)
    nH = Hp // th

    def pad2(w, rows, cols):
        return jnp.pad(w, ((0, rows - w.shape[0]), (0, cols - w.shape[1])))

    w1t = pad2(params["w1_w"].T, Dp, Hp).astype(jnp.bfloat16)     # [Dp, Hp]
    w3t = pad2(params["w3_w"].T, Dp, Hp).astype(jnp.bfloat16)     # [Dp, Hp]

    # Pre-block per hidden tile and fuse: w13[h] = [w1[:, h*th:(h+1)*th] | w3[...]]
    w1b = w1t.reshape(Dp, nH, th).transpose(1, 0, 2)              # [nH, Dp, th]
    w3b = w3t.reshape(Dp, nH, th).transpose(1, 0, 2)              # [nH, Dp, th]
    w13 = jnp.concatenate([w1b, w3b], axis=-1)                    # [nH, Dp, 2*th]

    b1 = jnp.pad(params["w1_b"], (0, Hp - dim)).astype(jnp.float32).reshape(nH, 1, th)
    b3 = jnp.pad(params["w3_b"], (0, Hp - dim)).astype(jnp.float32).reshape(nH, 1, th)
    b13 = jnp.concatenate([b1, b3], axis=-1)                      # [nH, 1, 2*th]

    return {
        "dim": dim, "Dp": Dp, "Hp": Hp, "th": th,
        "w13": w13,                                               # [nH, Dp, 2*th] bf16
        "b13": b13,                                               # [nH, 1, 2*th]  f32
        "w2t": pad2(params["w2_w"].T, Hp, Dp).astype(jnp.bfloat16),  # [Hp, Dp] bf16
        "b2": jnp.pad(params["w2_b"], (0, Dp - dim)).reshape(1, Dp).astype(jnp.float32),
    }


def _device_kind():
    try:
        return jax.devices()[0].device_kind.lower()
    except Exception:  # pragma: no cover - defensive; defaults are conservative
        return ""


def feed_forward(x, prep, *, block_batch=None, vmem_limit_bytes=None):
    """x: [B, dim] (f32 or bf16).  prep: output of prepare_params()."""
    B, dim = x.shape
    assert dim == prep["dim"]
    Dp, Hp, th = prep["Dp"], prep["Hp"], prep["th"]

    kind = _device_kind()
    if block_batch is None:
        # Weight-stream arithmetic intensity ~ tb flops/byte.  Roofline knees:
        # v6e ~650 (918 TF/s / 1.4 TB/s), v5e ~240, v7x ~310 per TC but only
        # 64 MiB VMEM -> smaller tile.
        if "v6" in kind:
            block_batch = 1024
        else:                       # v5e / v7x / unknown
            block_batch = 512
    if vmem_limit_bytes is None:
        # v5e/v6e have 128 MiB physical VMEM; v7x only 64 MiB per TC.
        vmem_limit_bytes = (96 * 1024 * 1024 if ("v5" in kind or "v6" in kind)
                            else 56 * 1024 * 1024)

    # Batch tiling: minimal padding, multiple-of-16 rows (bf16 vreg packing),
    # and as many tiles as ceil(B / block_batch) so large B always yields >=2
    # tiles (keeps both v7x TensorCores busy via the "parallel" axis).
    n_bt = max(1, -(-B // block_batch))
    tb = _round_up(-(-B // n_bt), 16)
    Bp = n_bt * tb

    # Pad once if needed; keep x's dtype (kernel casts tiles to bf16 in-register,
    # avoiding an extra HBM read+write pass here).
    xp = x if (Bp, Dp) == (B, dim) else jnp.pad(x, ((0, Bp - B), (0, Dp - dim)))

    nH = Hp // th
    grid = (n_bt, nH)

    cost = pl.CostEstimate(
        flops=6 * Bp * Dp * Hp,                       # three matmuls, 2*B*D*H each
        transcendentals=Bp * Hp,                      # sigmoid in silu
        bytes_accessed=(
            n_bt * (2 * 3 * Dp * Hp)                  # bf16 weights, re-streamed per batch tile
            + Bp * Dp * xp.dtype.itemsize             # x
            + 4 * Bp * Dp                             # f32 out
            + n_bt * 4 * (2 * Hp + Dp)                # f32 biases per batch tile
        ),
    )

    out = pl.pallas_call(
        _ffn_kernel,
        out_shape=jax.ShapeDtypeStruct((Bp, Dp), jnp.float32),
        grid_spec=pltpu.PrefetchScalarGridSpec(
            num_scalar_prefetch=0,
            grid=grid,
            in_specs=[
                pl.BlockSpec((tb, Dp), lambda i, h: (i, 0)),            # x tile
                pl.BlockSpec((1, Dp, 2 * th), lambda i, h: (h, 0, 0)),  # fused w1|w3 tile (contiguous slab)
                pl.BlockSpec((1, 1, 2 * th), lambda i, h: (h, 0, 0)),   # fused b1|b3 tile
                pl.BlockSpec((th, Dp), lambda i, h: (h, 0)),            # w2^T tile
                pl.BlockSpec((1, Dp), lambda i, h: (0, 0)),             # b2 (added at init)
            ],
            out_specs=pl.BlockSpec((tb, Dp), lambda i, h: (i, 0)),      # resident across h -> accumulator
        ),
        compiler_params=pltpu.CompilerParams(
            dimension_semantics=("parallel", "arbitrary"),
            vmem_limit_bytes=vmem_limit_bytes,
        ),
        cost_estimate=cost,
    )(xp, prep["w13"], prep["b13"], prep["w2t"], prep["b2"])

    # Padded rows/cols are garbage/zero respectively -> slice off.
    return out[:B, :dim]


def init_params(key, dim):
    """Deterministic init mimicking nn.Linear's uniform(-1/sqrt(dim), 1/sqrt(dim))."""
    bound = 1.0 / jnp.sqrt(dim)
    keys = jax.random.split(key, 6)
    u = lambda k, shape: jax.random.uniform(
        k, shape, dtype=jnp.float32, minval=-bound, maxval=bound)
    return {
        "w1_w": u(keys[0], (dim, dim)), "w1_b": u(keys[1], (dim,)),
        "w2_w": u(keys[2], (dim, dim)), "w2_b": u(keys[3], (dim,)),
        "w3_w": u(keys[4], (dim, dim)), "w3_b": u(keys[5], (dim,)),
    }


def _reference(x, p):
    """Reference matching the kernel's bf16 MXU inputs / f32 accumulation."""
    xb = x.astype(jnp.bfloat16)

    def lin(a, w, b):
        return jnp.dot(a, w.T.astype(jnp.bfloat16),
                       preferred_element_type=jnp.float32) + b

    h1 = lin(xb, p["w1_w"], p["w1_b"])
    h3 = lin(xb, p["w3_w"], p["w3_b"])
    g = (jax.nn.silu(h1) * h3).astype(jnp.bfloat16)
    return jnp.dot(g, p["w2_w"].T.astype(jnp.bfloat16),
                   preferred_element_type=jnp.float32) + p["w2_b"]


def _reference_f32(x, p):
    """Pure f32 PyTorch-semantics reference (loose check only)."""
    lin = lambda a, w, b: a @ w.T + b
    h1 = lin(x, p["w1_w"], p["w1_b"])
    h3 = lin(x, p["w3_w"], p["w3_b"])
    return lin(jax.nn.silu(h1) * h3, p["w2_w"], p["w2_b"])


if __name__ == "__main__":
    dim = 16      # FeedForward default dim
    batch = 8

    key = jax.random.PRNGKey(0)
    kx, kp = jax.random.split(key)
    x = jax.random.normal(kx, (batch, dim), dtype=jnp.float32)
    params = init_params(kp, dim)

    prep = prepare_params(params, dim)      # one-time weight prep (not per call)
    out = jax.block_until_ready(feed_forward(x, prep))

    assert out.shape == (batch, dim)
    # Tight check vs a bf16-input / f32-accumulate reference (same quantization
    # as the kernel's MXU path).
    ref = _reference(x, params)
    assert jnp.allclose(out, ref, atol=1e-2, rtol=1e-2), "mismatch vs bf16 reference"
    # Loose sanity check vs the pure-f32 module semantics.
    ref32 = _reference_f32(x, params)
    assert jnp.allclose(out, ref32, atol=1e-1, rtol=1e-1), "mismatch vs f32 reference"

    print("KERNEL_OK")
</pallas_src>

<mosaic_0001>
module attributes {stable_mosaic.version = 11 : i64} {
  func.func @_ffn_kernel(%arg0: i32, %arg1: i32, %arg2: memref<16x128xf32, #tpu.memory_space<vmem>>, %arg3: memref<1x128x256xbf16, #tpu.memory_space<vmem>>, %arg4: memref<1x1x256xf32, #tpu.memory_space<vmem>>, %arg5: memref<128x128xbf16, #tpu.memory_space<vmem>>, %arg6: memref<1x128xf32, #tpu.memory_space<vmem>>, %arg7: memref<16x128xf32, #tpu.memory_space<vmem>>) attributes {dimension_semantics = [#tpu.dimension_semantics<parallel>, #tpu.dimension_semantics<arbitrary>], iteration_bounds = array<i64: 1, 1>, scalar_prefetch = 0 : i64, scratch_operands = 0 : i64, tpu.core_type = #tpu.core_type<tc>, window_params = [{transform_indices = @transform_0, window_bounds = array<i64: 16, 128>}, {transform_indices = @transform_1, window_bounds = array<i64: 1, 128, 256>}, {transform_indices = @transform_2, window_bounds = array<i64: 1, 1, 256>}, {transform_indices = @transform_3, window_bounds = array<i64: 128, 128>}, {pipeline_mode = #tpu.pipeline_mode<synchronous>, transform_indices = @transform_4, window_bounds = array<i64: 1, 128>}, {transform_indices = @transform_5, window_bounds = array<i64: 16, 128>}]} {
    %c0_i32 = arith.constant 0 : i32
    %0 = arith.cmpi eq, %arg1, %c0_i32 : i32
    %1 = arith.extui %0 : i1 to i32
    %c0_i32_0 = arith.constant 0 : i32
    %2 = arith.cmpi ne, %1, %c0_i32_0 : i32
    scf.if %2 {
      %c0_16 = arith.constant 0 : index
      %c0_17 = arith.constant 0 : index
      %27 = vector.load %arg6[%c0_16, %c0_17] : memref<1x128xf32, #tpu.memory_space<vmem>>, vector<1x128xf32>
      %28 = vector.shape_cast %27 : vector<1x128xf32> to vector<1x128xf32>
      %29 = vector.broadcast %28 : vector<1x128xf32> to vector<16x128xf32>
      %c0_18 = arith.constant 0 : index
      %c0_19 = arith.constant 0 : index
      %30 = vector.load %arg7[%c0_18, %c0_19] : memref<16x128xf32, #tpu.memory_space<vmem>>, vector<16x128xf32>
      tpu.vector_store %arg7[%c0_18, %c0_19], %29 {strides = array<i32>} : memref<16x128xf32, #tpu.memory_space<vmem>>, vector<16x128xf32>,
    } else {
    }
    %c0 = arith.constant 0 : index
    %c0_1 = arith.constant 0 : index
    %3 = vector.load %arg2[%c0, %c0_1] : memref<16x128xf32, #tpu.memory_space<vmem>>, vector<16x128xf32>
    %4 = arith.truncf %3 : vector<16x128xf32> to vector<16x128xbf16>
    %c0_2 = arith.constant 0 : index
    %c0_3 = arith.constant 0 : index
    %c0_4 = arith.constant 0 : index
    %5 = vector.load %arg3[%c0_2, %c0_3, %c0_4] : memref<1x128x256xbf16, #tpu.memory_space<vmem>>, vector<1x128x256xbf16>
    %6 = vector.shape_cast %5 : vector<1x128x256xbf16> to vector<128x256xbf16>
    %cst = arith.constant dense<0.000000e+00> : vector<16x256xf32>
    %7 = tpu.matmul %4, %6, %cst {dimension_numbers = #tpu.dot_dimension_numbers<[1], [0], [0], [1], [0, 0, 1, 1], [], []>} : vector<16x128xbf16>, vector<128x256xbf16>, vector<16x256xf32> -> vector<16x256xf32>
    %c0_5 = arith.constant 0 : index
    %c0_6 = arith.constant 0 : index
    %c0_7 = arith.constant 0 : index
    %8 = vector.load %arg4[%c0_5, %c0_6, %c0_7] : memref<1x1x256xf32, #tpu.memory_space<vmem>>, vector<1x1x256xf32>
    %9 = vector.shape_cast %8 : vector<1x1x256xf32> to vector<1x256xf32>
    %10 = vector.broadcast %9 : vector<1x256xf32> to vector<16x256xf32>
    %11 = arith.addf %7, %10 : vector<16x256xf32>
    %12 = vector.extract_strided_slice %11 {offsets = [0, 0], sizes = [16, 128], strides = [1, 1]} : vector<16x256xf32> to vector<16x128xf32>
    %13 = vector.extract_strided_slice %11 {offsets = [0, 128], sizes = [16, 128], strides = [1, 1]} : vector<16x256xf32> to vector<16x128xf32>
    %14 = arith.negf %12 : vector<16x128xf32>
    %15 = math.exp %14 : vector<16x128xf32>
    %cst_8 = arith.constant 1.000000e+00 : f32
    %16 = vector.broadcast %cst_8 : f32 to vector<16x128xf32>
    %17 = arith.addf %16, %15 : vector<16x128xf32>
    %18 = arith.divf %16, %17 : vector<16x128xf32>
    %19 = arith.mulf %12, %18 : vector<16x128xf32>
    %20 = arith.mulf %19, %13 : vector<16x128xf32>
    %c0_9 = arith.constant 0 : index
    %c0_10 = arith.constant 0 : index
    %21 = vector.load %arg7[%c0_9, %c0_10] : memref<16x128xf32, #tpu.memory_space<vmem>>, vector<16x128xf32>
    %22 = arith.truncf %20 : vector<16x128xf32> to vector<16x128xbf16>
    %c0_11 = arith.constant 0 : index
    %c0_12 = arith.constant 0 : index
    %23 = vector.load %arg5[%c0_11, %c0_12] : memref<128x128xbf16, #tpu.memory_space<vmem>>, vector<128x128xbf16>
    %cst_13 = arith.constant dense<0.000000e+00> : vector<16x128xf32>
    %24 = tpu.matmul %22, %23, %cst_13 {dimension_numbers = #tpu.dot_dimension_numbers<[1], [0], [0], [1], [0, 0, 1, 1], [], []>} : vector<16x128xbf16>, vector<128x128xbf16>, vector<16x128xf32> -> vector<16x128xf32>
    %25 = arith.addf %21, %24 : vector<16x128xf32>
    %c0_14 = arith.constant 0 : index
    %c0_15 = arith.constant 0 : index
    %26 = vector.load %arg7[%c0_14, %c0_15] : memref<16x128xf32, #tpu.memory_space<vmem>>, vector<16x128xf32>
    tpu.vector_store %arg7[%c0_14, %c0_15], %25 {strides = array<i32>} : memref<16x128xf32, #tpu.memory_space<vmem>>, vector<16x128xf32>,
    return
  }
  func.func @transform_0(%arg0: i32, %arg1: i32) -> (i32, i32) {
    %c0_i32 = arith.constant 0 : i32
    %c0_i32_0 = arith.constant 0 : i32
    return %arg0, %c0_i32 : i32, i32
  }
  func.func @transform_1(%arg0: i32, %arg1: i32) -> (i32, i32, i32) {
    %c0_i32 = arith.constant 0 : i32
    %c0_i32_0 = arith.constant 0 : i32
    %c0_i32_1 = arith.constant 0 : i32
    return %arg1, %c0_i32, %c0_i32_0 : i32, i32, i32
  }
  func.func @transform_2(%arg0: i32, %arg1: i32) -> (i32, i32, i32) {
    %c0_i32 = arith.constant 0 : i32
    %c0_i32_0 = arith.constant 0 : i32
    %c0_i32_1 = arith.constant 0 : i32
    return %arg1, %c0_i32, %c0_i32_0 : i32, i32, i32
  }
  func.func @transform_3(%arg0: i32, %arg1: i32) -> (i32, i32) {
    %c0_i32 = arith.constant 0 : i32
    %c0_i32_0 = arith.constant 0 : i32
    return %arg1, %c0_i32 : i32, i32
  }
  func.func @transform_4(%arg0: i32, %arg1: i32) -> (i32, i32) {
    %c0_i32 = arith.constant 0 : i32
    %c0_i32_0 = arith.constant 0 : i32
    %c0_i32_1 = arith.constant 0 : i32
    return %c0_i32, %c0_i32_0 : i32, i32
  }
  func.func @transform_5(%arg0: i32, %arg1: i32) -> (i32, i32) {
    %c0_i32 = arith.constant 0 : i32
    %c0_i32_0 = arith.constant 0 : i32
    return %arg0, %c0_i32 : i32, i32
  }
}

</mosaic_0001>

<bundles_post_ra>
// kernel: tpu_custom_call.1
= control target key start
LH: loop header
LB: loop body
LE: loop exit
PB: predicated region body
PF: predicated region fallthrough
CT: control target
= control target key end

     0   :  { %10 = vsyncpa [#allocation3], 0  ;;  %s637_s0 = inlined_call_operand.hbm [shape: f32[16,128], index: 0, kind: input, shape index: {}]   ;;  %s638_s1 = inlined_call_operand.hbm [shape: bf16[1,128,256], index: 1, kind: input, shape index: {}]   ;;  %s639_s2 = inlined_call_operand.vmem [shape: f32[1,1,256], index: 2, kind: input, shape index: {}]   ;;  %s640_s3 = inlined_call_operand.hbm [shape: bf16[128,128], index: 3, kind: input, shape index: {}]   ;;  %s641_s4 = inlined_call_operand.vmem [shape: f32[1,128], index: 4, kind: input, shape index: {}]   ;;  %s642_s5 = inlined_call_operand.hbm [shape: f32[16,128], index: 5, kind: output, shape index: {}]  }
   0x1   :  { %11 = vsyncpa [#allocation6], 0 }
   0x2   :  { %12 = vsyncpa [#allocation4], 0  ;;  %s569_s18 = smov [#allocation5]   ;;  %s570_s20 = smov [#allocation2]  }
   0x3   :  { %s30_s19 = sshll.u32 %s569_s18, 4  ;;  %s18_s21 = sshll.u32 %s570_s20, 4  ;;  %s31_s19 = int_to_ptr.vmem [resolvable:$true] %s30_s19  ;;  %s19_s21 = int_to_ptr.vmem [resolvable:$true] %s18_s21 }
   0x4   :  { %s491_s22 = scalar_lea.vmem %s31_s19, 2048  ;;  %p496_p1 = scmp.lt.s32.totalorder %s31_s19, %s31_s19 }
   0x5   :  { %p492_p0 = scmp.ne.s32.totalorder %s31_s19, %s491_s22  ;;  %p497_p2 = scmp.lt.s32.totalorder %s491_s22, %s491_s22 }
   0x7   :  { %p498_p3 = por %p497_p2, %p496_p1 }
   0x9   :  { %p499_p4 = pnand %p498_p3, %p492_p0 }
   0xb   :  { %502 = shalt.err (!%p499_p4)
}
   0xc   :  { %s571_s23 = smov 128   ;;  %s572_s24 = smov 8  }
   0xd   :  { %36 = dma.hbm_to_vmem [thread:$0]  %s638_s1, 2048, %s31_s19, [#allocation6], %s571_s23, %s571_s23, %s572_s24  }
   0xe   :  { %s511_s27 = scalar_lea.vmem %s19_s21, 256  ;;  %p516_p6 = scmp.lt.s32.totalorder %s19_s21, %s19_s21 }
   0xf   :  { %p512_p5 = scmp.ne.s32.totalorder %s19_s21, %s511_s27  ;;  %p517_p7 = scmp.lt.s32.totalorder %s511_s27, %s511_s27 }
  0x11   :  { %p518_p8 = por %p517_p7, %p516_p6 }
  0x13   :  { %p519_p9 = pnand %p518_p8, %p512_p5 }
  0x15   :  { %522 = shalt.err (!%p519_p9)
}
  0x16   :  { %24 = dma.hbm_to_vmem [thread:$0]  %s637_s0, 256, %s19_s21, [#allocation3], %s571_s23, %s571_s23, %s572_s24  }
  0x17   :  { %s573_s30 = smov [#allocation7]  }
  0x18   :  { %s44_s6 = sshll.u32 %s573_s30, 4  ;;  %s45_s6 = int_to_ptr.vmem [resolvable:$true] %s44_s6 }
  0x19   :  { %s531_s7 = scalar_lea.vmem %s45_s6, 1024  ;;  %p536_p11 = scmp.lt.s32.totalorder %s45_s6, %s45_s6 }
  0x1a   :  { %p532_p10 = scmp.ne.s32.totalorder %s45_s6, %s531_s7  ;;  %p537_p12 = scmp.lt.s32.totalorder %s531_s7, %s531_s7 }
  0x1c   :  { %p538_p13 = por %p537_p12, %p536_p11 }
  0x1e   :  { %p539_p0 = pnand %p538_p13, %p532_p10 }
  0x20   :  { %542 = shalt.err (!%p539_p0)
}
  0x21   :  { %s574_s1 = smov 64   ;;  %s575_s8 = smov 4  }
  0x22   :  { %50 = dma.hbm_to_vmem [thread:$0]  %s640_s3, 1024, %s45_s6, [#allocation6], %s574_s1, %s574_s1, %s575_s8  }
  0x23   :  { %563 = dma.done.wait [#allocation3], 256  }
  0x24   :  { %564 = vsyncadd [#allocation3], 4294967040 }
  0x25   :  { %565 = dma.done.wait [#allocation6], 3072  }
  0x26   :  { %566 = vsyncadd [#allocation6], 4294964224  ;;  %v576_v0 = vmov 0   ;;  %v443_v1 = vld [vmem:[#allocation5 + $0x74] ss:$8 sps:$4 sm:$0xff]   ;;  %v577_v21 = vmov 0.0   ;;  %v97_v29 = vlaneseq }
  0x27   :  { %219 = vmatprep.mubr.bf16.mxu0 %v576_v0  ;;  %v445_v2 = vld [vmem:[#allocation5 + $0x70] ss:$8 sps:$4 sm:$0xff]   ;;  %187 = vmatprep.subr.bf16.mxu0 %v443_v1  ;;  %v446_v3 = vld [vmem:[#allocation5 + $0x64] ss:$8 sps:$4 sm:$0xff]   ;;  %v448_v4 = vld [vmem:[#allocation5 + $0x60] ss:$8 sps:$4 sm:$0xff]  }
  0x28   :  { %188 = vmatpush1.bf16.msra.mxu0 %v445_v2  ;;  %v449_v5 = vld [vmem:[#allocation5 + $0x54] ss:$8 sps:$4 sm:$0xff]   ;;  %v451_v6 = vld [vmem:[#allocation5 + $0x50] ss:$8 sps:$4 sm:$0xff]   ;;  %v452_v7 = vld [vmem:[#allocation5 + $0x44] ss:$8 sps:$4 sm:$0xff]   ;;  %412 = vmatprep.subr.bf16.mxu1 %v577_v21 }
  0x29   :  { %189 = vmatprep.subr.bf16.mxu0 %v446_v3  ;;  %v454_v8 = vld [vmem:[#allocation5 + $0x40] ss:$8 sps:$4 sm:$0xff]   ;;  %v455_v9 = vld [vmem:[#allocation5 + $0x34] ss:$8 sps:$4 sm:$0xff]   ;;  %v457_v10 = vld [vmem:[#allocation5 + $0x30] ss:$8 sps:$4 sm:$0xff]  }
  0x2a   :  { %v458_v11 = vld [vmem:[#allocation5 + $0x24] ss:$8 sps:$4 sm:$0xff]   ;;  %v460_v12 = vld [vmem:[#allocation5 + $0x20] ss:$8 sps:$4 sm:$0xff]   ;;  %v461_v13 = vld [vmem:[#allocation5 + $0x14] ss:$8 sps:$4 sm:$0xff]  }
  0x2b   :  { %v463_v14 = vld [vmem:[#allocation5 + $0x10] ss:$8 sps:$4 sm:$0xff]   ;;  %v464_v15 = vld [vmem:[#allocation5 + $0x4] ss:$8 sps:$4 sm:$0xff]   ;;  %v466_v16 = vld [vmem:[#allocation5] ss:$8 sps:$4 sm:$0xff]  }
  0x2c   :  { %190 = vmatpush1.bf16.msra.mxu0 %v448_v4  ;;  %v76_v17 = vld [vmem:[#allocation2] sm:$0xff]  ;;  %v77_v18 = vld [vmem:[#allocation2 + $0x8] sm:$0xff]  ;;  %v469_v23 = vld [vmem:[#allocation7 + $0x28] sm:$0xff]   ;;  %vm578_vm0 = vmmov 0   ;;  %v98_v30 = vshrl.u32 %v97_v29, 7  ;;  %s579_s12 = smov [#allocation8]  }
  0x2d   :  { %191 = vmatprep.subr.bf16.mxu0 %v449_v5  ;;  %v78_v19 = vpack.c.bf16 %v77_v18, %v76_v17  ;;  %v467_v20 = vld [vmem:[#allocation7 + $0x38] sm:$0xff]   ;;  %v468_v22 = vld [vmem:[#allocation7 + $0x30] sm:$0xff]   ;;  %v470_v24 = vld [vmem:[#allocation7 + $0x20] sm:$0xff]   ;;  %428 = vmatprep.mubr.msk.bf16.mxu1 %vm578_vm0, %v577_v21  ;;  %s363_s13 = sshll.u32 %s579_s12, 4  ;;  %s364_s13 = int_to_ptr.vmem [resolvable:$true] %s363_s13 }
  0x2e   :  { %413 = vmatpush3.bf16.msra.mxu1 %v467_v20  ;;  %v471_v25 = vld [vmem:[#allocation7 + $0x18] sm:$0xff]   ;;  %v472_v26 = vld [vmem:[#allocation7 + $0x10] sm:$0xff]   ;;  %v473_v27 = vld [vmem:[#allocation7 + $0x8] sm:$0xff]   ;;  %v99_v31 = vsub.s32 0, %v98_v30  ;;  %v103_v45 = vsub.s32 1, %v98_v30  ;;  %s543_s14 = scalar_lea.vmem %s364_s13, 256  ;;  %p548_p2 = scmp.lt.s32.totalorder %s364_s13, %s364_s13 }
  0x2f   :  { %414 = vmatprep.subr.bf16.mxu1 %v577_v21  ;;  %v474_v28 = vld [vmem:[#allocation7] sm:$0xff]   ;;  %v95_v32 = vld [vmem:[%s639_s2] sm:$0x3]  ;;  %p544_p1 = scmp.ne.s32.totalorder %s364_s13, %s543_s14  ;;  %p549_p3 = scmp.lt.s32.totalorder %s543_s14, %s543_s14 }
  0x30   :  { %192 = vmatpush1.bf16.msra.mxu0 %v451_v6  ;;  %v100_v33 = vrot.slane %v95_v32, %v99_v31  ;;  %v104_v47 = vrot.slane %v95_v32, %v103_v45  ;;  %v376_v57 = vld [vmem:[%s641_s4] ss:$0 sm:$0xff] }
  0x31   :  { %193 = vmatprep.subr.bf16.mxu0 %v452_v7  ;;  %p550_p4 = por %p549_p3, %p548_p2 }
  0x32   :  { %415 = vmatpush3.bf16.msra.mxu1 %v468_v22 }
  0x33   :  { %416 = vmatprep.subr.bf16.mxu1 %v577_v21  ;;  %p551_p5 = pnand %p550_p4, %p544_p1 }
  0x34   :  { %194 = vmatpush1.bf16.msra.mxu0 %v454_v8 }
  0x35   :  { %195 = vmatprep.subr.bf16.mxu0 %v455_v9 }
  0x36   :  { %417 = vmatpush3.bf16.msra.mxu1 %v469_v23 }
  0x37   :  { %418 = vmatprep.subr.bf16.mxu1 %v577_v21 }
  0x38   :  { %196 = vmatpush1.bf16.msra.mxu0 %v457_v10 }
  0x39   :  { %197 = vmatprep.subr.bf16.mxu0 %v458_v11 }
  0x3a   :  { %419 = vmatpush3.bf16.msra.mxu1 %v470_v24 }
  0x3b   :  { %420 = vmatprep.subr.bf16.mxu1 %v577_v21 }
  0x3c   :  { %198 = vmatpush1.bf16.msra.mxu0 %v460_v12 }
  0x3d   :  { %199 = vmatprep.subr.bf16.mxu0 %v461_v13 }
  0x3e   :  { %421 = vmatpush3.bf16.msra.mxu1 %v471_v25 }
  0x3f   :  { %422 = vmatprep.subr.bf16.mxu1 %v577_v21 }
  0x40   :  { %200 = vmatpush1.bf16.msra.mxu0 %v463_v14 }
  0x41   :  { %201 = vmatprep.subr.bf16.mxu0 %v464_v15 }
  0x42   :  { %423 = vmatpush3.bf16.msra.mxu1 %v472_v26 }
  0x43   :  { %424 = vmatprep.subr.bf16.mxu1 %v577_v21 }
  0x44   :  { %202 = vmatpush1.bf16.msra.mxu0 %v466_v16 }
  0x46   :  { %425 = vmatpush3.bf16.msra.mxu1 %v473_v27 }
  0x47   :  { %220 = vmatmul.mubr.bf16.vlgmr.msra.gmra.mxu0 %v78_v19  ;;  %426 = vmatprep.subr.bf16.mxu1 %v577_v21 }
  0x4a   :  { %427 = vmatpush3.bf16.msra.mxu1 %v474_v28 }
 0x107   :  { %v221_v34 = vpop.f32.mrf.mxu0 }
 0x108   :  { %v222_v35 = vadd.f32 %v221_v34, %v100_v33 }
 0x109   :  { %v223_v36 = vpop.f32.mrf.mxu0 }
 0x10a   :  { %v393_v37 = vmul.f32 -1.442695, %v222_v35  ;;  %v224_v51 = vadd.f32 %v223_v36, %v104_v47 }
 0x10b   :  { %v225_v38 = vpop.f32.mrf.mxu0 }
 0x10c   :  { %475 = vpow2.f32 %v393_v37  ;;  %v226_v39 = vadd.f32 %v225_v38, %v100_v33 }
 0x10d   :  { %v227_v48 = vpop.f32.mrf.mxu0 }
 0x10e   :  { %v394_v40 = vmul.f32 -1.442695, %v226_v39  ;;  %v228_v53 = vadd.f32 %v227_v48, %v104_v47 }
 0x110   :  { %477 = vpow2.f32 %v394_v40 }
 0x119   :  { %v476_v41 = vpop.eup %475 }
 0x11a   :  { %v236_v42 = vadd.f32 1.0, %v476_v41 }
 0x11c   :  { %479 = vrcp.f32 %v236_v42 }
 0x11d   :  { %v478_v43 = vpop.eup %477 }
 0x11e   :  { %v237_v44 = vadd.f32 1.0, %v478_v43 }
 0x120   :  { %481 = vrcp.f32 %v237_v44 }
 0x129   :  { %v480_v46 = vpop.eup %479 }
 0x12a   :  { %v242_v49 = vmul.f32 %v480_v46, %v222_v35 }
 0x12c   :  { %v244_v54 = vmul.f32 %v242_v49, %v224_v51 }
 0x12d   :  { %v482_v50 = vpop.eup %481 }
 0x12e   :  { %v243_v52 = vmul.f32 %v482_v50, %v226_v39 }
 0x130   :  { %v245_v55 = vmul.f32 %v243_v52, %v228_v53 }
 0x132   :  { %v248_v56 = vpack.c.bf16 %v245_v55, %v244_v54 }
 0x134   :  { %429 = vmatmul.mubr.bf16.vlgmr.msra.gmra.mxu1 %v248_v56 }
 0x1f4   :  { %v347_v58 = vpop.f32.mrf.mxu1 }
 0x1f5   :  { %v354_v59 = vadd.f32 %v376_v57, %v347_v58 }
 0x1f6   :  { %v430_v60 = vpop.f32.mrf.mxu1 }
 0x1f7   :  { %356 = vst [vmem:[#allocation8] sm:$0xff] %v354_v59 }
 0x1f8   :  { %v350_v61 = vpop.f32.mrf.mxu1 }
 0x1f9   :  { %v355_v62 = vadd.f32 %v376_v57, %v350_v61 }
 0x1fa   :  { %v431_v63 = vpop.f32.mrf.mxu1 }
 0x1fb   :  { %357 = vst [vmem:[#allocation8 + $0x8] sm:$0xff] %v355_v62 }
 0x1fc   :  { %554 = shalt.err (!%p551_p5)
}
 0x1fd   :  { %369 = dma.vmem_to_hbm [thread:$0]  %s364_s13, 256, %s642_s5, [#allocation4], %s571_s23, %s571_s23, %s572_s24  }
 0x1fe   :  { %567 = dma.done.wait [#allocation4], 256  }
 0x1ff   :  { %568 = vsyncadd [#allocation4], 4294967040 }
 0x200   :  { %373 = vsyncpa [#allocation3], 1 }
 0x201   :  { %374 = vsyncpa [#allocation6], 1 }
 0x202   :  { %375 = vsyncpa [#allocation4], 1 }

</bundles_post_ra>
